<compile_context>
chip_gen: v7x
topology: tpu7x:2x2x1
jax: 0.10.0
libtpu: 0.0.40
codegen_flags: <defaults>
</compile_context>

<pallas_src>
import math

import jax
import jax.numpy as jnp
from jax import lax
from jax.experimental import pallas as pl
from jax.experimental.pallas import tpu as pltpu


# ----------------------------------------------------------------------------
# Tiling helpers
# ----------------------------------------------------------------------------

def _sublane_align(dtype):
    # 8 sublanes for 4-byte dtypes, 16 for 2-byte (bf16) packing.
    return 16 if jnp.dtype(dtype).itemsize == 2 else 8


def _pick_tile(dim, target, align):
    """Largest tile <= target that is a multiple of `align` and divides `dim`.

    Only falls back to the full extent when no aligned divisor exists at all
    (a full-extent block is always legal for Mosaic).
    """
    if dim <= target:
        return dim
    t = (target // align) * align
    while t >= align:
        if dim % t == 0:
            return t
        t -= align
    return dim  # TODO(synk): pad M to a multiple of `align` instead.


# ----------------------------------------------------------------------------
# Generic tiled linear:  out = x @ wT + b
# ----------------------------------------------------------------------------

def _linear_kernel(x_ref, w_ref, b_ref, o_ref, acc_ref):
    @pl.when(pl.program_id(2) == 0)
    def _():
        acc_ref[...] = jnp.zeros_like(acc_ref)

    acc_ref[...] += jnp.dot(x_ref[...], w_ref[...],
                            preferred_element_type=jnp.float32)

    @pl.when(pl.program_id(2) == pl.num_programs(2) - 1)
    def _():
        o_ref[...] = (acc_ref[...] + b_ref[...]).astype(o_ref.dtype)


def linear(x, wT, b, *, tm=256, tn=256, tk=512):
    """x: (M, K); wT: (K, N) already transposed; b: (1, N)."""
    M, K = x.shape
    N = wT.shape[1]
    tm = _pick_tile(M, tm, _sublane_align(x.dtype))
    tn = _pick_tile(N, tn, 128)
    tk = _pick_tile(K, tk, 128)
    grid = (pl.cdiv(M, tm), pl.cdiv(N, tn), pl.cdiv(K, tk))
    return pl.pallas_call(
        _linear_kernel,
        out_shape=jax.ShapeDtypeStruct((M, N), x.dtype),
        grid=grid,
        in_specs=[
            pl.BlockSpec((tm, tk), lambda i, j, k: (i, k)),
            pl.BlockSpec((tk, tn), lambda i, j, k: (k, j)),
            pl.BlockSpec((1, tn), lambda i, j, k: (0, j)),
        ],
        out_specs=pl.BlockSpec((tm, tn), lambda i, j, k: (i, j)),
        scratch_shapes=[pltpu.VMEM((tm, tn), jnp.float32)],
        compiler_params=pltpu.CompilerParams(
            dimension_semantics=("parallel", "parallel", "arbitrary")),
    )(x, wT, b)


# ----------------------------------------------------------------------------
# Fused Q/K/V projection: three separate activation inputs, stacked weights.
# (No stacked HBM copy of the activations.)
# ----------------------------------------------------------------------------

def _qkv_linear_kernel(q_ref, k_ref, v_ref, w_ref, b_ref,
                       qo_ref, ko_ref, vo_ref, acc_ref):
    @pl.when(pl.program_id(2) == 0)
    def _():
        acc_ref[...] = jnp.zeros_like(acc_ref)

    acc_ref[0] += jnp.dot(q_ref[...], w_ref[0], preferred_element_type=jnp.float32)
    acc_ref[1] += jnp.dot(k_ref[...], w_ref[1], preferred_element_type=jnp.float32)
    acc_ref[2] += jnp.dot(v_ref[...], w_ref[2], preferred_element_type=jnp.float32)

    @pl.when(pl.program_id(2) == pl.num_programs(2) - 1)
    def _():
        qo_ref[...] = (acc_ref[0] + b_ref[0]).astype(qo_ref.dtype)
        ko_ref[...] = (acc_ref[1] + b_ref[1]).astype(ko_ref.dtype)
        vo_ref[...] = (acc_ref[2] + b_ref[2]).astype(vo_ref.dtype)


def qkv_project(q, k, v, wT, b, *, tm=256, tn=256, tk=512):
    """q/k/v: (M, K); wT: (3, K, N) pre-transposed; b: (3, 1, N)."""
    M, K = q.shape
    N = wT.shape[2]
    tm = _pick_tile(M, tm, _sublane_align(q.dtype))
    tn = _pick_tile(N, tn, 128)
    tk = _pick_tile(K, tk, 128)
    grid = (M // tm, N // tn, K // tk)

    act_spec = pl.BlockSpec((tm, tk), lambda i, j, kk: (i, kk))
    out_spec = pl.BlockSpec((tm, tn), lambda i, j, kk: (i, j))
    out_sds = jax.ShapeDtypeStruct((M, N), q.dtype)

    return pl.pallas_call(
        _qkv_linear_kernel,
        out_shape=(out_sds, out_sds, out_sds),
        grid=grid,
        in_specs=[
            act_spec, act_spec, act_spec,
            pl.BlockSpec((3, tk, tn), lambda i, j, kk: (0, kk, j)),
            pl.BlockSpec((3, 1, tn), lambda i, j, kk: (0, 0, j)),
        ],
        out_specs=(out_spec, out_spec, out_spec),
        scratch_shapes=[pltpu.VMEM((3, tm, tn), jnp.float32)],
        compiler_params=pltpu.CompilerParams(
            dimension_semantics=("parallel", "parallel", "arbitrary")),
    )(q, k, v, wT, b)


# ----------------------------------------------------------------------------
# Attention core (all heads per step) with fused output projection
# ----------------------------------------------------------------------------

def _make_mha_kernel(num_heads, depth, emit_attn):
    inv_sqrt_depth = 1.0 / math.sqrt(depth)

    def kernel(*refs):
        if emit_attn:
            (q_ref, k_ref, v_ref, bias_ref, wo_ref, bo_ref,
             o_ref, attn_ref, ctx_ref) = refs
        else:
            (q_ref, k_ref, v_ref, bias_ref, wo_ref, bo_ref,
             o_ref, ctx_ref) = refs

        # Scale q ONCE (Sq*D multiplies) instead of the (Sq,Sk) logits per head.
        q = q_ref[0] * inv_sqrt_depth          # (tq, D)
        k = k_ref[0]                           # (Sk, D)
        v = v_ref[0]                           # (Sk, D)
        bias = bias_ref[0, 0]                  # (tq, Sk) = mask*(-1e9) + adjoin

        for h in range(num_heads):             # small static unroll over heads
            lo = h * depth
            qh = q[:, lo:lo + depth]
            kh = k[:, lo:lo + depth]
            vh = v[:, lo:lo + depth]

            # 'qd,kd->qk' — contract last dims directly (MXU trans_b path),
            # no kh.T materialization / XLU transpose.
            logits = lax.dot_general(
                qh, kh, (((1,), (1,)), ((), ())),
                preferred_element_type=jnp.float32)
            logits = logits + bias

            # Exact, numerically stable softmax (matches jax.nn.softmax).
            logits = logits - jnp.max(logits, axis=-1, keepdims=True)
            e = jnp.exp(logits)
            attn = e / jnp.sum(e, axis=-1, keepdims=True)

            if emit_attn:
                attn_ref[0, h] = attn.astype(attn_ref.dtype)

            # Head context goes straight into the (tq, D) scratch slab: no
            # Python-list concat, bounded vreg live ranges.
            ctx_ref[:, lo:lo + depth] = jnp.dot(
                attn.astype(vh.dtype), vh, preferred_element_type=jnp.float32)

        # Fused `dense` output projection (epilogue) -> lane-dense (tq, D) out.
        out = jnp.dot(ctx_ref[...].astype(wo_ref.dtype), wo_ref[...],
                      preferred_element_type=jnp.float32)
        o_ref[0] = (out + bo_ref[...]).astype(o_ref.dtype)

    return kernel


def mha_attention(q_p, k_p, v_p, bias, dense_wT, dense_b, *, num_heads,
                  tq_target=256, return_attention_weights=True):
    """q_p: (B, Sq, D); k_p/v_p: (B, Sk, D); bias: (B, 1, Sq, Sk)."""
    B, Sq, D = q_p.shape
    Sk = k_p.shape[1]
    depth = D // num_heads
    tq = _pick_tile(Sq, tq_target, _sublane_align(q_p.dtype))

    kernel = _make_mha_kernel(num_heads, depth, return_attention_weights)

    out_shapes = [jax.ShapeDtypeStruct((B, Sq, D), q_p.dtype)]
    out_specs = [pl.BlockSpec((1, tq, D), lambda b, i: (b, i, 0))]
    if return_attention_weights:
        out_shapes.append(
            jax.ShapeDtypeStruct((B, num_heads, Sq, Sk), q_p.dtype))
        out_specs.append(
            pl.BlockSpec((1, num_heads, tq, Sk), lambda b, i: (b, 0, i, 0)))

    # Scoped-VMEM budget from the actual (double-buffered) block footprint.
    isz = jnp.dtype(q_p.dtype).itemsize
    bsz = jnp.dtype(bias.dtype).itemsize
    per_step = (tq * D + 2 * Sk * D + tq * D) * isz + tq * Sk * bsz
    if return_attention_weights:
        per_step += num_heads * tq * Sk * isz
    resident = (D * D + D) * isz + tq * D * 4       # dense w/b + fp32 scratch
    vmem_limit = int(min(max(2 * (2 * per_step + resident), 32 * 1024 * 1024),
                         128 * 1024 * 1024))

    results = pl.pallas_call(
        kernel,
        out_shape=tuple(out_shapes),
        grid=(B, Sq // tq),
        in_specs=[
            pl.BlockSpec((1, tq, D), lambda b, i: (b, i, 0)),
            pl.BlockSpec((1, Sk, D), lambda b, i: (b, 0, 0)),
            pl.BlockSpec((1, Sk, D), lambda b, i: (b, 0, 0)),
            pl.BlockSpec((1, 1, tq, Sk), lambda b, i: (b, 0, i, 0)),
            pl.BlockSpec((D, D), lambda b, i: (0, 0)),   # dense weight (resident)
            pl.BlockSpec((1, D), lambda b, i: (0, 0)),   # dense bias
        ],
        out_specs=tuple(out_specs),
        scratch_shapes=[pltpu.VMEM((tq, D), jnp.float32)],
        compiler_params=pltpu.CompilerParams(
            dimension_semantics=("parallel", "parallel"),
            vmem_limit_bytes=vmem_limit),
    )(q_p, k_p, v_p, bias, dense_wT, dense_b)

    if return_attention_weights:
        out, attn = results
        return out, attn
    (out,) = results
    return out, None


# ----------------------------------------------------------------------------
# Module wrapper
# ----------------------------------------------------------------------------

class MultiHeadAttention:
    def __init__(self, d_model, num_heads, dropout, key):
        assert d_model % num_heads == 0
        self.d_model = d_model
        self.num_heads = num_heads
        self.depth = d_model // num_heads
        self.dropout = dropout  # identity (eval mode)

        keys = jax.random.split(key, 8)
        bound = 1.0 / math.sqrt(d_model)  # torch.nn.Linear default init range

        def init_wT(kw):   # stored already transposed: y = x @ wT + b
            return jax.random.uniform(kw, (d_model, d_model), jnp.float32,
                                      -bound, bound)

        def init_b(kb):
            return jax.random.uniform(kb, (1, d_model), jnp.float32,
                                      -bound, bound)

        # Pre-transposed, pre-stacked q/k/v weights (no per-call transposes).
        self.w_qkv_T = jnp.stack([init_wT(keys[0]), init_wT(keys[2]),
                                  init_wT(keys[4])], axis=0)          # (3, D, D)
        self.b_qkv = jnp.stack([init_b(keys[1]), init_b(keys[3]),
                                init_b(keys[5])], axis=0)             # (3, 1, D)
        self.dense_wT = init_wT(keys[6])                              # (D, D)
        self.dense_b = init_b(keys[7])                                # (1, D)

    def __call__(self, v, k, q, mask, adjoin_matrix):
        B, Sq, D = q.shape
        Sk = k.shape[1]

        if Sq == Sk:
            # One pallas_call, three separate activation inputs (no HBM stack).
            q_p, k_p, v_p = qkv_project(q.reshape(B * Sq, D),
                                        k.reshape(B * Sk, D),
                                        v.reshape(B * Sk, D),
                                        self.w_qkv_T, self.b_qkv)
            q_p = q_p.reshape(B, Sq, D)
            k_p = k_p.reshape(B, Sk, D)
            v_p = v_p.reshape(B, Sk, D)
        else:
            q_p = linear(q.reshape(B * Sq, D), self.w_qkv_T[0],
                         self.b_qkv[0]).reshape(B, Sq, D)
            k_p = linear(k.reshape(B * Sk, D), self.w_qkv_T[1],
                         self.b_qkv[1]).reshape(B, Sk, D)
            v_p = linear(v.reshape(B * Sk, D), self.w_qkv_T[2],
                         self.b_qkv[2]).reshape(B, Sk, D)

        # Single pre-combined additive bias: one O(B*S^2) DMA stream instead of
        # two (mask semantics: 1.0 == masked position, as in the reference).
        if mask is not None and adjoin_matrix is not None:
            bias = mask * (-1e9) + adjoin_matrix
        elif mask is not None:
            bias = mask * (-1e9)
        elif adjoin_matrix is not None:
            bias = adjoin_matrix
        else:
            bias = jnp.zeros((B, 1, Sq, Sk), q_p.dtype)

        output, attention_weights = mha_attention(
            q_p, k_p, v_p, bias, self.dense_wT, self.dense_b,
            num_heads=self.num_heads, return_attention_weights=True)
        return output, attention_weights


# ----------------------------------------------------------------------------
# Pure-JAX reference for verification (HIGHEST precision = true fp32 matmuls)
# ----------------------------------------------------------------------------

def reference_forward(mha, v, k, q, mask, adjoin_matrix):
    B, Sq, D = q.shape
    Sk = k.shape[1]
    H, depth = mha.num_heads, mha.depth
    hp = lax.Precision.HIGHEST

    q_p = jnp.dot(q, mha.w_qkv_T[0], precision=hp) + mha.b_qkv[0]
    k_p = jnp.dot(k, mha.w_qkv_T[1], precision=hp) + mha.b_qkv[1]
    v_p = jnp.dot(v, mha.w_qkv_T[2], precision=hp) + mha.b_qkv[2]

    def sh(x, S):
        return x.reshape(B, S, H, depth).transpose(0, 2, 1, 3)

    qh, kh, vh = sh(q_p, Sq), sh(k_p, Sk), sh(v_p, Sk)
    logits = jnp.einsum("bhqd,bhkd->bhqk", qh, kh,
                        precision=hp) / math.sqrt(depth)
    logits = logits + mask * (-1e9) + adjoin_matrix
    attn = jax.nn.softmax(logits, axis=-1)
    ctx = jnp.einsum("bhqk,bhkd->bhqd", attn, vh, precision=hp)
    concat = ctx.transpose(0, 2, 1, 3).reshape(B, Sq, D)
    out = jnp.dot(concat, mha.dense_wT, precision=hp) + mha.dense_b
    return out, attn


# ----------------------------------------------------------------------------
# Main
# ----------------------------------------------------------------------------

if __name__ == "__main__":
    key = jax.random.PRNGKey(0)
    k_param, k_q, k_k, k_v, k_mask, k_adj = jax.random.split(key, 6)

    B, S, d_model, num_heads = 2, 8, 32, 4
    dropout = 0.1

    mha = MultiHeadAttention(d_model, num_heads, dropout, k_param)

    q = jax.random.normal(k_q, (B, S, d_model), jnp.float32)
    k_in = jax.random.normal(k_k, (B, S, d_model), jnp.float32)
    v_in = jax.random.normal(k_v, (B, S, d_model), jnp.float32)
    # padding-style mask: 1.0 == masked position, broadcast over heads
    mask = (jax.random.uniform(k_mask, (B, 1, S, S)) < 0.2).astype(jnp.float32)
    adjoin_matrix = jax.random.normal(k_adj, (B, 1, S, S), jnp.float32)

    out, attn_w = mha(v_in, k_in, q, mask, adjoin_matrix)
    out = jax.block_until_ready(out)
    attn_w = jax.block_until_ready(attn_w)

    ref_out, ref_attn = reference_forward(mha, v_in, k_in, q, mask, adjoin_matrix)

    assert out.shape == (B, S, d_model)
    assert attn_w.shape == (B, num_heads, S, S)
    assert jnp.allclose(out, ref_out, atol=2e-3, rtol=2e-3)
    assert jnp.allclose(attn_w, ref_attn, atol=2e-3, rtol=2e-3)

    print("KERNEL_OK")
</pallas_src>

<mosaic_0001>
module attributes {stable_mosaic.version = 11 : i64} {
  func.func @_qkv_linear_kernel(%arg0: i32, %arg1: i32, %arg2: i32, %arg3: memref<16x32xf32, #tpu.memory_space<vmem>>, %arg4: memref<16x32xf32, #tpu.memory_space<vmem>>, %arg5: memref<16x32xf32, #tpu.memory_space<vmem>>, %arg6: memref<3x32x32xf32, #tpu.memory_space<vmem>>, %arg7: memref<3x1x32xf32, #tpu.memory_space<vmem>>, %arg8: memref<16x32xf32, #tpu.memory_space<vmem>>, %arg9: memref<16x32xf32, #tpu.memory_space<vmem>>, %arg10: memref<16x32xf32, #tpu.memory_space<vmem>>, %arg11: memref<3x16x32xf32, #tpu.memory_space<vmem>>) attributes {dimension_semantics = [#tpu.dimension_semantics<parallel>, #tpu.dimension_semantics<parallel>, #tpu.dimension_semantics<arbitrary>], iteration_bounds = array<i64: 1, 1, 1>, scalar_prefetch = 0 : i64, scratch_operands = 1 : i64, tpu.core_type = #tpu.core_type<tc>, window_params = [{transform_indices = @transform_0, window_bounds = array<i64: 16, 32>}, {transform_indices = @transform_1, window_bounds = array<i64: 16, 32>}, {transform_indices = @transform_2, window_bounds = array<i64: 16, 32>}, {transform_indices = @transform_3, window_bounds = array<i64: 3, 32, 32>}, {transform_indices = @transform_4, window_bounds = array<i64: 3, 1, 32>}, {transform_indices = @transform_5, window_bounds = array<i64: 16, 32>}, {transform_indices = @transform_6, window_bounds = array<i64: 16, 32>}, {transform_indices = @transform_7, window_bounds = array<i64: 16, 32>}]} {
    %c0_i32 = arith.constant 0 : i32
    %0 = arith.cmpi eq, %arg2, %c0_i32 : i32
    %1 = arith.extui %0 : i1 to i32
    %c0_i32_0 = arith.constant 0 : i32
    %2 = arith.cmpi ne, %1, %c0_i32_0 : i32
    scf.if %2 {
      %cst_35 = arith.constant 0.000000e+00 : f32
      %36 = vector.broadcast %cst_35 : f32 to vector<3x16x32xf32>
      %c0_36 = arith.constant 0 : index
      %c0_37 = arith.constant 0 : index
      %c0_38 = arith.constant 0 : index
      %37 = vector.load %arg11[%c0_36, %c0_37, %c0_38] : memref<3x16x32xf32, #tpu.memory_space<vmem>>, vector<3x16x32xf32>
      tpu.vector_store %arg11[%c0_36, %c0_37, %c0_38], %36 {strides = array<i32>} : memref<3x16x32xf32, #tpu.memory_space<vmem>>, vector<3x16x32xf32>,
    } else {
    }
    %c0 = arith.constant 0 : index
    %c0_1 = arith.constant 0 : index
    %c0_2 = arith.constant 0 : index
    %3 = vector.load %arg11[%c0, %c0_1, %c0_2] : memref<3x16x32xf32, #tpu.memory_space<vmem>>, vector<1x16x32xf32>
    %4 = vector.shape_cast %3 : vector<1x16x32xf32> to vector<16x32xf32>
    %c0_3 = arith.constant 0 : index
    %c0_4 = arith.constant 0 : index
    %5 = vector.load %arg3[%c0_3, %c0_4] : memref<16x32xf32, #tpu.memory_space<vmem>>, vector<16x32xf32>
    %c0_5 = arith.constant 0 : index
    %c0_6 = arith.constant 0 : index
    %c0_7 = arith.constant 0 : index
    %6 = vector.load %arg6[%c0_5, %c0_6, %c0_7] : memref<3x32x32xf32, #tpu.memory_space<vmem>>, vector<1x32x32xf32>
    %7 = vector.shape_cast %6 : vector<1x32x32xf32> to vector<32x32xf32>
    %cst = arith.constant dense<0.000000e+00> : vector<16x32xf32>
    %8 = tpu.matmul %5, %7, %cst {dimension_numbers = #tpu.dot_dimension_numbers<[1], [0], [0], [1], [0, 0, 1, 1], [], []>} : vector<16x32xf32>, vector<32x32xf32>, vector<16x32xf32> -> vector<16x32xf32>
    %9 = arith.addf %4, %8 : vector<16x32xf32>
    %c0_8 = arith.constant 0 : index
    %c0_9 = arith.constant 0 : index
    %c0_10 = arith.constant 0 : index
    %10 = vector.load %arg11[%c0_8, %c0_9, %c0_10] : memref<3x16x32xf32, #tpu.memory_space<vmem>>, vector<1x16x32xf32>
    %11 = vector.shape_cast %10 : vector<1x16x32xf32> to vector<16x32xf32>
    %12 = vector.shape_cast %9 : vector<16x32xf32> to vector<1x16x32xf32>
    tpu.vector_store %arg11[%c0_8, %c0_9, %c0_10], %12 {strides = array<i32>} : memref<3x16x32xf32, #tpu.memory_space<vmem>>, vector<1x16x32xf32>,
    %c1 = arith.constant 1 : index
    %c0_11 = arith.constant 0 : index
    %c0_12 = arith.constant 0 : index
    %13 = vector.load %arg11[%c1, %c0_11, %c0_12] : memref<3x16x32xf32, #tpu.memory_space<vmem>>, vector<1x16x32xf32>
    %14 = vector.shape_cast %13 : vector<1x16x32xf32> to vector<16x32xf32>
    %c0_13 = arith.constant 0 : index
    %c0_14 = arith.constant 0 : index
    %15 = vector.load %arg4[%c0_13, %c0_14] : memref<16x32xf32, #tpu.memory_space<vmem>>, vector<16x32xf32>
    %c1_15 = arith.constant 1 : index
    %c0_16 = arith.constant 0 : index
    %c0_17 = arith.constant 0 : index
    %16 = vector.load %arg6[%c1_15, %c0_16, %c0_17] : memref<3x32x32xf32, #tpu.memory_space<vmem>>, vector<1x32x32xf32>
    %17 = vector.shape_cast %16 : vector<1x32x32xf32> to vector<32x32xf32>
    %cst_18 = arith.constant dense<0.000000e+00> : vector<16x32xf32>
    %18 = tpu.matmul %15, %17, %cst_18 {dimension_numbers = #tpu.dot_dimension_numbers<[1], [0], [0], [1], [0, 0, 1, 1], [], []>} : vector<16x32xf32>, vector<32x32xf32>, vector<16x32xf32> -> vector<16x32xf32>
    %19 = arith.addf %14, %18 : vector<16x32xf32>
    %c1_19 = arith.constant 1 : index
    %c0_20 = arith.constant 0 : index
    %c0_21 = arith.constant 0 : index
    %20 = vector.load %arg11[%c1_19, %c0_20, %c0_21] : memref<3x16x32xf32, #tpu.memory_space<vmem>>, vector<1x16x32xf32>
    %21 = vector.shape_cast %20 : vector<1x16x32xf32> to vector<16x32xf32>
    %22 = vector.shape_cast %19 : vector<16x32xf32> to vector<1x16x32xf32>
    tpu.vector_store %arg11[%c1_19, %c0_20, %c0_21], %22 {strides = array<i32>} : memref<3x16x32xf32, #tpu.memory_space<vmem>>, vector<1x16x32xf32>,
    %c2 = arith.constant 2 : index
    %c0_22 = arith.constant 0 : index
    %c0_23 = arith.constant 0 : index
    %23 = vector.load %arg11[%c2, %c0_22, %c0_23] : memref<3x16x32xf32, #tpu.memory_space<vmem>>, vector<1x16x32xf32>
    %24 = vector.shape_cast %23 : vector<1x16x32xf32> to vector<16x32xf32>
    %c0_24 = arith.constant 0 : index
    %c0_25 = arith.constant 0 : index
    %25 = vector.load %arg5[%c0_24, %c0_25] : memref<16x32xf32, #tpu.memory_space<vmem>>, vector<16x32xf32>
    %c2_26 = arith.constant 2 : index
    %c0_27 = arith.constant 0 : index
    %c0_28 = arith.constant 0 : index
    %26 = vector.load %arg6[%c2_26, %c0_27, %c0_28] : memref<3x32x32xf32, #tpu.memory_space<vmem>>, vector<1x32x32xf32>
    %27 = vector.shape_cast %26 : vector<1x32x32xf32> to vector<32x32xf32>
    %cst_29 = arith.constant dense<0.000000e+00> : vector<16x32xf32>
    %28 = tpu.matmul %25, %27, %cst_29 {dimension_numbers = #tpu.dot_dimension_numbers<[1], [0], [0], [1], [0, 0, 1, 1], [], []>} : vector<16x32xf32>, vector<32x32xf32>, vector<16x32xf32> -> vector<16x32xf32>
    %29 = arith.addf %24, %28 : vector<16x32xf32>
    %c2_30 = arith.constant 2 : index
    %c0_31 = arith.constant 0 : index
    %c0_32 = arith.constant 0 : index
    %30 = vector.load %arg11[%c2_30, %c0_31, %c0_32] : memref<3x16x32xf32, #tpu.memory_space<vmem>>, vector<1x16x32xf32>
    %31 = vector.shape_cast %30 : vector<1x16x32xf32> to vector<16x32xf32>
    %32 = vector.shape_cast %29 : vector<16x32xf32> to vector<1x16x32xf32>
    tpu.vector_store %arg11[%c2_30, %c0_31, %c0_32], %32 {strides = array<i32>} : memref<3x16x32xf32, #tpu.memory_space<vmem>>, vector<1x16x32xf32>,
    %c0_i32_33 = arith.constant 0 : i32
    %33 = arith.cmpi eq, %arg2, %c0_i32_33 : i32
    %34 = arith.extui %33 : i1 to i32
    %c0_i32_34 = arith.constant 0 : i32
    %35 = arith.cmpi ne, %34, %c0_i32_34 : i32
    scf.if %35 {
      %c0_35 = arith.constant 0 : index
      %c0_36 = arith.constant 0 : index
      %c0_37 = arith.constant 0 : index
      %36 = vector.load %arg11[%c0_35, %c0_36, %c0_37] : memref<3x16x32xf32, #tpu.memory_space<vmem>>, vector<1x16x32xf32>
      %37 = vector.shape_cast %36 : vector<1x16x32xf32> to vector<16x32xf32>
      %c0_38 = arith.constant 0 : index
      %c0_39 = arith.constant 0 : index
      %c0_40 = arith.constant 0 : index
      %38 = vector.load %arg7[%c0_38, %c0_39, %c0_40] : memref<3x1x32xf32, #tpu.memory_space<vmem>>, vector<1x1x32xf32>
      %39 = vector.shape_cast %38 : vector<1x1x32xf32> to vector<1x32xf32>
      %40 = vector.broadcast %39 : vector<1x32xf32> to vector<16x32xf32>
      %41 = arith.addf %37, %40 : vector<16x32xf32>
      %c0_41 = arith.constant 0 : index
      %c0_42 = arith.constant 0 : index
      %42 = vector.load %arg8[%c0_41, %c0_42] : memref<16x32xf32, #tpu.memory_space<vmem>>, vector<16x32xf32>
      tpu.vector_store %arg8[%c0_41, %c0_42], %41 {strides = array<i32>} : memref<16x32xf32, #tpu.memory_space<vmem>>, vector<16x32xf32>,
      %c1_43 = arith.constant 1 : index
      %c0_44 = arith.constant 0 : index
      %c0_45 = arith.constant 0 : index
      %43 = vector.load %arg11[%c1_43, %c0_44, %c0_45] : memref<3x16x32xf32, #tpu.memory_space<vmem>>, vector<1x16x32xf32>
      %44 = vector.shape_cast %43 : vector<1x16x32xf32> to vector<16x32xf32>
      %c1_46 = arith.constant 1 : index
      %c0_47 = arith.constant 0 : index
      %c0_48 = arith.constant 0 : index
      %45 = vector.load %arg7[%c1_46, %c0_47, %c0_48] : memref<3x1x32xf32, #tpu.memory_space<vmem>>, vector<1x1x32xf32>
      %46 = vector.shape_cast %45 : vector<1x1x32xf32> to vector<1x32xf32>
      %47 = vector.broadcast %46 : vector<1x32xf32> to vector<16x32xf32>
      %48 = arith.addf %44, %47 : vector<16x32xf32>
      %c0_49 = arith.constant 0 : index
      %c0_50 = arith.constant 0 : index
      %49 = vector.load %arg9[%c0_49, %c0_50] : memref<16x32xf32, #tpu.memory_space<vmem>>, vector<16x32xf32>
      tpu.vector_store %arg9[%c0_49, %c0_50], %48 {strides = array<i32>} : memref<16x32xf32, #tpu.memory_space<vmem>>, vector<16x32xf32>,
      %c2_51 = arith.constant 2 : index
      %c0_52 = arith.constant 0 : index
      %c0_53 = arith.constant 0 : index
      %50 = vector.load %arg11[%c2_51, %c0_52, %c0_53] : memref<3x16x32xf32, #tpu.memory_space<vmem>>, vector<1x16x32xf32>
      %51 = vector.shape_cast %50 : vector<1x16x32xf32> to vector<16x32xf32>
      %c2_54 = arith.constant 2 : index
      %c0_55 = arith.constant 0 : index
      %c0_56 = arith.constant 0 : index
      %52 = vector.load %arg7[%c2_54, %c0_55, %c0_56] : memref<3x1x32xf32, #tpu.memory_space<vmem>>, vector<1x1x32xf32>
      %53 = vector.shape_cast %52 : vector<1x1x32xf32> to vector<1x32xf32>
      %54 = vector.broadcast %53 : vector<1x32xf32> to vector<16x32xf32>
      %55 = arith.addf %51, %54 : vector<16x32xf32>
      %c0_57 = arith.constant 0 : index
      %c0_58 = arith.constant 0 : index
      %56 = vector.load %arg10[%c0_57, %c0_58] : memref<16x32xf32, #tpu.memory_space<vmem>>, vector<16x32xf32>
      tpu.vector_store %arg10[%c0_57, %c0_58], %55 {strides = array<i32>} : memref<16x32xf32, #tpu.memory_space<vmem>>, vector<16x32xf32>,
    } else {
    }
    return
  }
  func.func @transform_0(%arg0: i32, %arg1: i32, %arg2: i32) -> (i32, i32) {
    %c0_i32 = arith.constant 0 : i32
    return %arg0, %arg2 : i32, i32
  }
  func.func @transform_1(%arg0: i32, %arg1: i32, %arg2: i32) -> (i32, i32) {
    %c0_i32 = arith.constant 0 : i32
    return %arg0, %arg2 : i32, i32
  }
  func.func @transform_2(%arg0: i32, %arg1: i32, %arg2: i32) -> (i32, i32) {
    %c0_i32 = arith.constant 0 : i32
    return %arg0, %arg2 : i32, i32
  }
  func.func @transform_3(%arg0: i32, %arg1: i32, %arg2: i32) -> (i32, i32, i32) {
    %c0_i32 = arith.constant 0 : i32
    %c0_i32_0 = arith.constant 0 : i32
    return %c0_i32, %arg2, %arg1 : i32, i32, i32
  }
  func.func @transform_4(%arg0: i32, %arg1: i32, %arg2: i32) -> (i32, i32, i32) {
    %c0_i32 = arith.constant 0 : i32
    %c0_i32_0 = arith.constant 0 : i32
    %c0_i32_1 = arith.constant 0 : i32
    return %c0_i32, %c0_i32_0, %arg1 : i32, i32, i32
  }
  func.func @transform_5(%arg0: i32, %arg1: i32, %arg2: i32) -> (i32, i32) {
    %c0_i32 = arith.constant 0 : i32
    return %arg0, %arg1 : i32, i32
  }
  func.func @transform_6(%arg0: i32, %arg1: i32, %arg2: i32) -> (i32, i32) {
    %c0_i32 = arith.constant 0 : i32
    return %arg0, %arg1 : i32, i32
  }
  func.func @transform_7(%arg0: i32, %arg1: i32, %arg2: i32) -> (i32, i32) {
    %c0_i32 = arith.constant 0 : i32
    return %arg0, %arg1 : i32, i32
  }
}

</mosaic_0001>

<bundles_post_ra>
// kernel: tpu_custom_call.1
= control target key start
LH: loop header
LB: loop body
LE: loop exit
PB: predicated region body
PF: predicated region fallthrough
CT: control target
= control target key end

     0   :  { %13 = vsyncpa [#allocation4], 0  ;;  %s938_s0 = inlined_call_operand.hbm [shape: f32[16,32], index: 0, kind: input, shape index: {}]   ;;  %s939_s1 = inlined_call_operand.hbm [shape: f32[16,32], index: 1, kind: input, shape index: {}]   ;;  %s940_s2 = inlined_call_operand.hbm [shape: f32[16,32], index: 2, kind: input, shape index: {}]   ;;  %s941_s3 = inlined_call_operand.hbm [shape: f32[3,32,32], index: 3, kind: input, shape index: {}]   ;;  %s942_s4 = inlined_call_operand.vmem [shape: f32[3,1,32], index: 4, kind: input, shape index: {}]   ;;  %s943_s5 = inlined_call_operand.hbm [shape: f32[16,32], index: 5, kind: output, shape index: {0}]   ;;  %s944_s6 = inlined_call_operand.hbm [shape: f32[16,32], index: 6, kind: output, shape index: {1}]   ;;  %s945_s7 = inlined_call_operand.hbm [shape: f32[16,32], index: 7, kind: output, shape index: {2}]  }
   0x1   :  { %14 = vsyncpa [#allocation7], 0 }
   0x2   :  { %15 = vsyncpa [#allocation10], 0 }
   0x3   :  { %16 = vsyncpa [#allocation5], 0 }
   0x4   :  { %17 = vsyncpa [#allocation13], 0  ;;  %s729_s24 = smov [#allocation6]   ;;  %s730_s26 = smov [#allocation3]  }
   0x5   :  { %s35_s25 = sshll.u32 %s729_s24, 4  ;;  %s23_s27 = sshll.u32 %s730_s26, 4  ;;  %s36_s25 = int_to_ptr.vmem [resolvable:$true] %s35_s25  ;;  %s779_s27 = int_to_ptr.vmem [resolvable:$true] %s23_s27 }
   0x6   :  { %s565_s30 = scalar_lea.hbm %s939_s1, 256 }
   0x7   :  { %p566_p0 = scmp.ne.s32.totalorder %s939_s1, %s565_s30  ;;  %p569_p1 = scmp.lt.u32.totalorder %s565_s30, %s939_s1 }
   0x9   :  { %p571_p2 = pnand %p569_p1, %p566_p0 }
   0xb   :  { %574 = shalt.err (!%p571_p2)
}
   0xc   :  { %s575_s12 = scalar_lea.vmem %s36_s25, 256  ;;  %p580_p4 = scmp.lt.s32.totalorder %s36_s25, %s36_s25 }
   0xd   :  { %p576_p3 = scmp.ne.s32.totalorder %s36_s25, %s575_s12  ;;  %p581_p5 = scmp.lt.s32.totalorder %s575_s12, %s575_s12 }
   0xf   :  { %p582_p6 = por %p581_p5, %p580_p4 }
  0x11   :  { %p583_p7 = pnand %p582_p6, %p576_p3 }
  0x13   :  { %586 = shalt.err (!%p583_p7)
}
  0x14   :  { %s731_s13 = smov 128   ;;  %s732_s14 = smov 8  }
  0x15   :  { %41 = dma.hbm_to_vmem [thread:$0]  %s939_s1, 256, %s36_s25, [#allocation7], %s731_s13, %s731_s13, %s732_s14  }
  0x16   :  { %s587_s19 = scalar_lea.hbm %s938_s0, 256 }
  0x17   :  { %p588_p8 = scmp.ne.s32.totalorder %s938_s0, %s587_s19  ;;  %p591_p9 = scmp.lt.u32.totalorder %s587_s19, %s938_s0 }
  0x19   :  { %p593_p10 = pnand %p591_p9, %p588_p8 }
  0x1b   :  { %596 = shalt.err (!%p593_p10)
}
  0x1c   :  { %s597_s24 = scalar_lea.vmem %s779_s27, 256  ;;  %p602_p12 = scmp.lt.s32.totalorder %s779_s27, %s779_s27 }
  0x1d   :  { %p598_p11 = scmp.ne.s32.totalorder %s779_s27, %s597_s24  ;;  %p603_p13 = scmp.lt.s32.totalorder %s597_s24, %s597_s24 }
  0x1f   :  { %p604_p0 = por %p603_p13, %p602_p12 }
  0x21   :  { %p605_p1 = pnand %p604_p0, %p598_p11 }
  0x23   :  { %608 = shalt.err (!%p605_p1)
}
  0x24   :  { %29 = dma.hbm_to_vmem [thread:$0]  %s938_s0, 256, %s779_s27, [#allocation4], %s731_s13, %s731_s13, %s732_s14  }
  0x25   :  { %s733_s26 = smov [#allocation8]   ;;  %s734_s29 = smov [#allocation9]  }
  0x26   :  { %s47_s28 = sshll.u32 %s733_s26, 4  ;;  %s59_s30 = sshll.u32 %s734_s29, 4  ;;  %s48_s28 = int_to_ptr.vmem [resolvable:$true] %s47_s28  ;;  %s816_s30 = int_to_ptr.vmem [resolvable:$true] %s59_s30 }
  0x27   :  { %s609_s10 = scalar_lea.hbm %s940_s2, 256 }
  0x28   :  { %p610_p2 = scmp.ne.s32.totalorder %s940_s2, %s609_s10  ;;  %p613_p3 = scmp.lt.u32.totalorder %s609_s10, %s940_s2 }
  0x2a   :  { %p615_p4 = pnand %p613_p3, %p610_p2 }
  0x2c   :  { %618 = shalt.err (!%p615_p4)
}
  0x2d   :  { %s619_s0 = scalar_lea.vmem %s48_s28, 256  ;;  %p624_p6 = scmp.lt.s32.totalorder %s48_s28, %s48_s28 }
  0x2e   :  { %p620_p5 = scmp.ne.s32.totalorder %s48_s28, %s619_s0  ;;  %p625_p7 = scmp.lt.s32.totalorder %s619_s0, %s619_s0 }
  0x30   :  { %p626_p8 = por %p625_p7, %p624_p6 }
  0x32   :  { %p627_p9 = pnand %p626_p8, %p620_p5 }
  0x34   :  { %630 = shalt.err (!%p627_p9)
}
  0x35   :  { %53 = dma.hbm_to_vmem [thread:$0]  %s940_s2, 256, %s48_s28, [#allocation7], %s731_s13, %s731_s13, %s732_s14  }
  0x36   :  { %s631_s20 = scalar_lea.hbm %s941_s3, 1536 }
  0x37   :  { %p632_p10 = scmp.ne.s32.totalorder %s941_s3, %s631_s20  ;;  %p635_p11 = scmp.lt.u32.totalorder %s631_s20, %s941_s3 }
  0x39   :  { %p637_p12 = pnand %p635_p11, %p632_p10 }
  0x3b   :  { %640 = shalt.err (!%p637_p12)
}
  0x3c   :  { %s641_s1 = scalar_lea.vmem %s816_s30, 1536  ;;  %p646_p0 = scmp.lt.s32.totalorder %s816_s30, %s816_s30 }
  0x3d   :  { %p642_p13 = scmp.ne.s32.totalorder %s816_s30, %s641_s1  ;;  %p647_p1 = scmp.lt.s32.totalorder %s641_s1, %s641_s1 }
  0x3f   :  { %p648_p2 = por %p647_p1, %p646_p0 }
  0x41   :  { %p649_p3 = pnand %p648_p2, %p642_p13 }
  0x43   :  { %652 = shalt.err (!%p649_p3)
}
  0x44   :  { %65 = dma.hbm_to_vmem [thread:$0]  %s941_s3, 1536, %s816_s30, [#allocation10], %s731_s13, %s731_s13, %s732_s14  }
  0x45   :  { %719 = dma.done.wait [#allocation4], 256  }
  0x46   :  { %720 = vsyncadd [#allocation4], 4294967040 }
  0x47   :  { %721 = dma.done.wait [#allocation7], 512  }
  0x48   :  { %722 = vsyncadd [#allocation7], 4294966784 }
  0x49   :  { %723 = dma.done.wait [#allocation10], 1536  }
  0x4a   :  { %724 = vsyncadd [#allocation10], 4294965760  ;;  %vm84_vm0 = vcmask 261120   ;;  %v735_v0 = vmov 0.0   ;;  %v95_v1 = vld [vmem:[#allocation9] sm:$0xff]  ;;  %v96_v2 = vld [vmem:[#allocation9 + $0x8] sm:$0xff] }
  0x4b   :  { %86 = vst.msk [vmem:[#allocation2 + $0x8] sm:$0xff] %vm84_vm0, %v735_v0  ;;  %85 = vst.msk [vmem:[#allocation2] sm:$0xff] %vm84_vm0, %v735_v0  ;;  %v97_v3 = vld [vmem:[#allocation9 + $0x10] sm:$0xff]  ;;  %v531_v4 = vpack.c.bf16 %v96_v2, %v95_v1  ;;  %v98_v5 = vld [vmem:[#allocation9 + $0x18] sm:$0xff]  ;;  %s736_s30 = smov [#allocation11]   ;;  %s737_s9 = smov [#allocation12]  }
  0x4c   :  { %87 = vst.msk [vmem:[#allocation2 + $0x10] sm:$0xff] %vm84_vm0, %v735_v0  ;;  %88 = vst.msk [vmem:[#allocation2 + $0x18] sm:$0xff] %vm84_vm0, %v735_v0  ;;  %v191_v6 = vld [vmem:[#allocation9 + $0x20] sm:$0xff]  ;;  %v192_v7 = vld [vmem:[#allocation9 + $0x28] sm:$0xff]  ;;  %v535_v8 = vpack.c.bf16 %v98_v5, %v97_v3  ;;  %s424_s8 = sshll.u32 %s736_s30, 4  ;;  %s436_s10 = sshll.u32 %s737_s9, 4  ;;  %s425_s8 = int_to_ptr.vmem [resolvable:$true] %s424_s8  ;;  %s877_s10 = int_to_ptr.vmem [resolvable:$true] %s436_s10 }
  0x4d   :  { %89 = vst.msk [vmem:[#allocation2 + $0x20] sm:$0xff] %vm84_vm0, %v735_v0  ;;  %90 = vst.msk [vmem:[#allocation2 + $0x28] sm:$0xff] %vm84_vm0, %v735_v0  ;;  %v539_v9 = vpack.c.bf16 %v192_v7, %v191_v6  ;;  %v93_v10 = vld [vmem:[#allocation3] sm:$0xff]  ;;  %v286_v11 = vld [vmem:[#allocation9 + $0x40] sm:$0xff]  ;;  %532 = vmatprep.subr.bf16.mxu0 %v531_v4  ;;  %s653_s15 = scalar_lea.vmem %s425_s8, 256  ;;  %p658_p5 = scmp.lt.s32.totalorder %s425_s8, %s425_s8 }
  0x4e   :  { %506 = vmatprep.mubr.msk.f32.mxu0 %vm84_vm0, %v93_v10  ;;  %v287_v12 = vld [vmem:[#allocation9 + $0x48] sm:$0xff]  ;;  %v193_v13 = vld [vmem:[#allocation9 + $0x30] sm:$0xff]  ;;  %v194_v14 = vld [vmem:[#allocation9 + $0x38] sm:$0xff]  ;;  %534 = vmatpush3.bf16.msra.mxu0 %v531_v4  ;;  %p654_p4 = scmp.ne.s32.totalorder %s425_s8, %s653_s15  ;;  %p659_p6 = scmp.lt.s32.totalorder %s653_s15, %s653_s15 }
  0x4f   :  { %540 = vmatprep.subr.bf16.mxu1 %v539_v9  ;;  %v543_v15 = vpack.c.bf16 %v194_v14, %v193_v13  ;;  %v188_v16 = vld [vmem:[#allocation6] sm:$0xff]  ;;  %536 = vmatprep.subr.bf16.mxu0 %v535_v8  ;;  %v547_v17 = vpack.c.bf16 %v287_v12, %v286_v11  ;;  %v288_v18 = vld [vmem:[#allocation9 + $0x50] sm:$0xff]  ;;  %v289_v19 = vld [vmem:[#allocation9 + $0x58] sm:$0xff] }
  0x50   :  { %542 = vmatpush3.bf16.msra.mxu1 %v539_v9  ;;  %517 = vmatprep.mubr.msk.f32.mxu1 %vm84_vm0, %v188_v16  ;;  %v94_v20 = vld [vmem:[#allocation3 + $0x8] sm:$0xff]  ;;  %v551_v21 = vpack.c.bf16 %v289_v19, %v288_v18  ;;  %v189_v22 = vld [vmem:[#allocation6 + $0x8] sm:$0xff]  ;;  %v283_v23 = vld [vmem:[#allocation8] sm:$0xff]  ;;  %p660_p7 = por %p659_p6, %p658_p5 }
  0x51   :  { %544 = vmatprep.subr.bf16.mxu1 %v543_v15  ;;  %v284_v24 = vld [vmem:[#allocation8 + $0x8] sm:$0xff]  ;;  %v475_v40 = vld [vmem:[%s942_s4] ss:$0 sm:$0xff]  ;;  %v477_v43 = vld [vmem:[%s942_s4 + $0x1] ss:$0 sm:$0xff] }
  0x52   :  { %538 = vmatpush3.bf16.msra.mxu0 %v535_v8  ;;  %v92_v25 = vld [vmem:[#allocation2 + $0x8] sm:$0xff]  ;;  %v91_v26 = vld [vmem:[#allocation2] sm:$0xff]  ;;  %p661_p8 = pnand %p660_p7, %p654_p4 }
  0x53   :  { %548 = vmatprep.subr.bf16.mxu0 %v547_v17  ;;  %v187_v27 = vld [vmem:[#allocation2 + $0x18] sm:$0xff]  ;;  %v186_v29 = vld [vmem:[#allocation2 + $0x10] sm:$0xff]  ;;  %v479_v53 = vld [vmem:[%s942_s4 + $0x2] ss:$0 sm:$0xff] }
  0x54   :  { %546 = vmatpush3.bf16.msra.mxu1 %v543_v15  ;;  %v282_v37 = vld [vmem:[#allocation2 + $0x28] sm:$0xff]  ;;  %v281_v38 = vld [vmem:[#allocation2 + $0x20] sm:$0xff] }
  0x55   :  { %507 = vmatmul.mubr.msk.f32.vlgmr.msra.gmra.mrb[0].mxu0 %vm84_vm0, %v94_v20 }
  0x56   :  { %550 = vmatpush3.bf16.msra.mxu0 %v547_v17  ;;  %528 = vmatprep.mubr.msk.f32.mxu0 %vm84_vm0, %v283_v23 }
  0x57   :  { %518 = vmatmul.mubr.msk.f32.vlgmr.msra.gmra.mrb[0].mxu1 %vm84_vm0, %v189_v22  ;;  %552 = vmatprep.subr.bf16.mxu0 %v551_v21 }
  0x5a   :  { %554 = vmatpush3.bf16.msra.mxu0 %v551_v21 }
  0x5d   :  { %529 = vmatmul.mubr.msk.f32.vlgmr.msra.gmra.mrb[2].mxu0 %vm84_vm0, %v284_v24 }
 0x128   :  { %v508_v28 = vpop.f32.mrb[0].mxu0 }
 0x129   :  { %v182_v30 = vadd.f32 %v508_v28, %v92_v25  ;;  %v172_v31 = vpop.f32.mrb[1].mxu0 }
 0x12a   :  { %v519_v32 = vpop.f32.mrb[0].mxu1  ;;  %v181_v33 = vadd.f32 %v172_v31, %v91_v26 }
 0x12b   :  { %v277_v34 = vadd.f32 %v519_v32, %v187_v27  ;;  %v267_v35 = vpop.f32.mrb[1].mxu1  ;;  %184 = vst.msk [vmem:[#allocation2 + $0x8] sm:$0xff] %vm84_vm0, %v182_v30 }
 0x12c   :  { %v276_v36 = vadd.f32 %v267_v35, %v186_v29  ;;  %183 = vst.msk [vmem:[#allocation2] sm:$0xff] %vm84_vm0, %v181_v33 }
 0x12d   :  { %279 = vst.msk [vmem:[#allocation2 + $0x18] sm:$0xff] %vm84_vm0, %v277_v34 }
 0x12e   :  { %278 = vst.msk [vmem:[#allocation2 + $0x10] sm:$0xff] %vm84_vm0, %v276_v36 }
 0x130   :  { %v530_v39 = vpop.f32.mrb[2].mxu0 }
 0x131   :  { %v372_v41 = vadd.f32 %v530_v39, %v282_v37  ;;  %v362_v42 = vpop.f32.mrb[3].mxu0 }
 0x132   :  { %v371_v44 = vadd.f32 %v362_v42, %v281_v38  ;;  %v379_v45 = vld [vmem:[#allocation2 + $0x8] sm:$0xff] }
 0x133   :  { %374 = vst.msk [vmem:[#allocation2 + $0x28] sm:$0xff] %vm84_vm0, %v372_v41  ;;  %v378_v47 = vld [vmem:[#allocation2] sm:$0xff]  ;;  %v388_v48 = vadd.f32 %v475_v40, %v379_v45 }
 0x134   :  { %v392_v46 = vld [vmem:[#allocation2 + $0x18] sm:$0xff]  ;;  %373 = vst.msk [vmem:[#allocation2 + $0x20] sm:$0xff] %vm84_vm0, %v371_v44  ;;  %v387_v51 = vadd.f32 %v475_v40, %v378_v47 }
 0x135   :  { %v391_v49 = vld [vmem:[#allocation2 + $0x10] sm:$0xff]  ;;  %v402_v50 = vadd.f32 %v477_v43, %v392_v46  ;;  %390 = vst.msk [vmem:[#allocation11 + $0x8] sm:$0xff] %vm84_vm0, %v388_v48 }
 0x136   :  { %v401_v52 = vadd.f32 %v477_v43, %v391_v49  ;;  %389 = vst.msk [vmem:[#allocation11] sm:$0xff] %vm84_vm0, %v387_v51 }
 0x137   :  { %404 = vst.msk [vmem:[#allocation12 + $0x8] sm:$0xff] %vm84_vm0, %v402_v50 }
 0x138   :  { %403 = vst.msk [vmem:[#allocation12] sm:$0xff] %vm84_vm0, %v401_v52 }
 0x139   :  { %664 = shalt.err (!%p661_p8)
}
 0x13a   :  { %s665_s27 = scalar_lea.hbm %s943_s5, 256 }
 0x13b   :  { %p666_p9 = scmp.ne.s32.totalorder %s943_s5, %s665_s27  ;;  %p669_p10 = scmp.lt.u32.totalorder %s665_s27, %s943_s5 }
 0x13d   :  { %p671_p11 = pnand %p669_p10, %p666_p9 }
 0x13f   :  { %674 = shalt.err (!%p671_p11)
}
 0x140   :  { %430 = dma.vmem_to_hbm [thread:$0]  %s425_s8, 256, %s943_s5, [#allocation5], %s731_s13, %s731_s13, %s732_s14  }
 0x141   :  { %s675_s22 = scalar_lea.vmem %s877_s10, 256  ;;  %p680_p13 = scmp.lt.s32.totalorder %s877_s10, %s877_s10 }
 0x142   :  { %p676_p12 = scmp.ne.s32.totalorder %s877_s10, %s675_s22  ;;  %p681_p0 = scmp.lt.s32.totalorder %s675_s22, %s675_s22 }
 0x144   :  { %p682_p1 = por %p681_p0, %p680_p13 }
 0x146   :  { %p683_p2 = pnand %p682_p1, %p676_p12 }
 0x148   :  { %686 = shalt.err (!%p683_p2)
}
 0x149   :  { %s687_s1 = scalar_lea.hbm %s944_s6, 256 }
 0x14a   :  { %p688_p3 = scmp.ne.s32.totalorder %s944_s6, %s687_s1  ;;  %p691_p4 = scmp.lt.u32.totalorder %s687_s1, %s944_s6 }
 0x14c   :  { %p693_p5 = pnand %p691_p4, %p688_p3 }
 0x14e   :  { %696 = shalt.err (!%p693_p5)
}
 0x14f   :  { %442 = dma.vmem_to_hbm [thread:$0]  %s877_s10, 256, %s944_s6, [#allocation13], %s731_s13, %s731_s13, %s732_s14   ;;  %v406_v54 = vld [vmem:[#allocation2 + $0x28] sm:$0xff]  ;;  %v405_v55 = vld [vmem:[#allocation2 + $0x20] sm:$0xff] }
 0x150   :  { %s738_s29 = smov [#allocation14]   ;;  %v416_v56 = vadd.f32 %v479_v53, %v406_v54  ;;  %v415_v57 = vadd.f32 %v479_v53, %v405_v55 }
 0x151   :  { %s448_s30 = sshll.u32 %s738_s29, 4  ;;  %s449_s30 = int_to_ptr.vmem [resolvable:$true] %s448_s30 }
 0x152   :  { %418 = vst.msk [vmem:[#allocation14 + $0x8] sm:$0xff] %vm84_vm0, %v416_v56  ;;  %417 = vst.msk [vmem:[#allocation14] sm:$0xff] %vm84_vm0, %v415_v57  ;;  %s697_s8 = scalar_lea.vmem %s449_s30, 256  ;;  %p702_p7 = scmp.lt.s32.totalorder %s449_s30, %s449_s30 }
 0x153   :  { %p698_p6 = scmp.ne.s32.totalorder %s449_s30, %s697_s8  ;;  %p703_p8 = scmp.lt.s32.totalorder %s697_s8, %s697_s8 }
 0x155   :  { %p704_p9 = por %p703_p8, %p702_p7 }
 0x157   :  { %p705_p10 = pnand %p704_p9, %p698_p6 }
 0x159   :  { %708 = shalt.err (!%p705_p10)
}
 0x15a   :  { %s709_s10 = scalar_lea.hbm %s945_s7, 256 }
 0x15b   :  { %p710_p11 = scmp.ne.s32.totalorder %s945_s7, %s709_s10  ;;  %p713_p12 = scmp.lt.u32.totalorder %s709_s10, %s945_s7 }
 0x15d   :  { %p715_p13 = pnand %p713_p12, %p710_p11 }
 0x15f   :  { %718 = shalt.err (!%p715_p13)
}
 0x160   :  { %454 = dma.vmem_to_hbm [thread:$0]  %s449_s30, 256, %s945_s7, [#allocation13], %s731_s13, %s731_s13, %s732_s14  }
 0x161   :  { %725 = dma.done.wait [#allocation5], 256  }
 0x162   :  { %726 = vsyncadd [#allocation5], 4294967040 }
 0x163   :  { %727 = dma.done.wait [#allocation13], 512  }
 0x164   :  { %728 = vsyncadd [#allocation13], 4294966784 }
 0x165   :  { %464 = vsyncpa [#allocation4], 1 }
 0x166   :  { %465 = vsyncpa [#allocation7], 1 }
 0x167   :  { %466 = vsyncpa [#allocation10], 1 }
 0x168   :  { %467 = vsyncpa [#allocation5], 1 }
 0x169   :  { %468 = vsyncpa [#allocation13], 1 }

</bundles_post_ra>
